<compile_context>
chip_gen: v7x
topology: tpu7x:2x2x1
jax: 0.10.0
libtpu: 0.0.40
codegen_flags: <defaults>
</compile_context>

<pallas_src>
import functools

import jax
import jax.numpy as jnp
from jax.experimental import pallas as pl
from jax.experimental.pallas import tpu as pltpu


def _lwconv_kernel(*refs, kernel_size, padding, t_in, t_out, has_bias):
    """One (channel-tile, batch) step: per-channel 1D conv along lane-dense time.

    refs = (x_ref[(Ct, T)], w_ref[(Ct, K)], [b_ref[(Ct, 1)]],
            o_ref[(Ct, T_out)], [pad_ref[(Ct, T + 2*padding)] scratch])
    """
    i = 0
    x_ref = refs[i]; i += 1
    w_ref = refs[i]; i += 1
    b_ref = None
    if has_bias:
        b_ref = refs[i]; i += 1
    o_ref = refs[i]; i += 1

    if padding > 0:
        pad_ref = refs[i]
        ct = x_ref.shape[0]
        # Zero only the pad columns and copy the tile into the interior:
        # this IS the conv's zero padding, done in VMEM (no extra HBM pass).
        zeros_edge = jnp.zeros((ct, padding), dtype=pad_ref.dtype)
        pad_ref[:, 0:padding] = zeros_edge
        pad_ref[:, padding + t_in:padding + t_in + padding] = zeros_edge
        pad_ref[:, padding:padding + t_in] = x_ref[...]
        src = pad_ref
    else:
        src = x_ref

    # K shifted multiply-adds on the VPU, f32 accumulator.  The source ref is
    # sliced per tap and cast per slice (no tile-sized f32 temp).
    acc = w_ref[:, 0:1].astype(jnp.float32) * src[:, 0:t_out].astype(jnp.float32)
    for k in range(1, kernel_size):
        acc = acc + (w_ref[:, k:k + 1].astype(jnp.float32)
                     * src[:, k:k + t_out].astype(jnp.float32))
    if has_bias:
        acc = acc + b_ref[...].astype(jnp.float32)
    o_ref[...] = acc.astype(o_ref.dtype)


def _choose_channel_tile(C, T_pad, itemsize):
    """Channel tile: multiple of 8 (or full C), input block ~<= 2 MiB."""
    if C <= 8:
        return C
    target_bytes = 2 * 1024 * 1024
    ct = target_bytes // max(1, T_pad * itemsize)
    ct = int(ct) // 8 * 8
    ct = max(8, min(ct, C))
    return C if ct >= C else ct


def lightweight_conv1d(x, weight, bias=None, *, padding=0, weight_softmax=False):
    """LightweightConv1d forward (inference) via Pallas.

    x:      (B, C, T) float array
    weight: (H, 1, K) per-head taps, with C % H == 0
    bias:   (C,) or None
    Returns (B, C, T_out) with T_out = T + 2*padding - K + 1.
    """
    B, C, T = x.shape
    H, _, K = weight.shape
    assert C % H == 0, "input_size must be divisible by num_heads"
    T_pad = T + 2 * padding
    T_out = T_pad - K + 1
    assert T_out >= 1

    w = weight[:, 0, :]                                     # (H, K)
    if weight_softmax:
        w = jax.nn.softmax(w, axis=-1)
    # FairseqDropout(weight_dropout): identity at inference -> omitted.

    # With the module's view(-1, H, T) + groups=H, channel c uses head c % H.
    w_per_chan = w[jnp.arange(C) % H]                       # (C, K), tiny gather
    has_bias = bias is not None
    b_col = bias.reshape(C, 1) if has_bias else None        # (C, 1)

    itemsize = jnp.dtype(x.dtype).itemsize
    Ct = _choose_channel_tile(C, T_pad, itemsize)
    num_c_blocks = pl.cdiv(C, Ct)

    kernel = functools.partial(
        _lwconv_kernel, kernel_size=K, padding=padding,
        t_in=T, t_out=T_out, has_bias=has_bias)

    # Grid: channel tiles outermost (helps v7x's 2 TCs when B is small/odd),
    # batch innermost; both axes are fully parallel (no reduction axis).
    in_specs = [
        pl.BlockSpec((None, Ct, T), lambda c, b: (b, c, 0)),   # input tile
        pl.BlockSpec((Ct, K), lambda c, b: (c, 0)),            # per-channel taps
    ]
    inputs = [x, w_per_chan]
    if has_bias:
        in_specs.append(pl.BlockSpec((Ct, 1), lambda c, b: (c, 0)))
        inputs.append(b_col)

    scratch_shapes = []
    if padding > 0:
        scratch_shapes.append(pltpu.VMEM((Ct, T_pad), x.dtype))

    # VMEM budget: double-buffered in/out blocks + scratch + small weight blocks.
    block_bytes = (2 * Ct * (T + T_out) * itemsize
                   + (Ct * T_pad * itemsize if padding > 0 else 0)
                   + 2 * Ct * (K + 1) * 4)
    vmem_limit = int(min(max(2 * block_bytes, 32 * 1024 * 1024),
                         64 * 1024 * 1024))

    w_itemsize = jnp.dtype(w_per_chan.dtype).itemsize
    cost = pl.CostEstimate(
        flops=2 * B * C * T_out * K,
        transcendentals=0,
        bytes_accessed=int(B * C * (T + T_out) * itemsize
                           + C * K * w_itemsize
                           + (C * itemsize if has_bias else 0)),
    )

    return pl.pallas_call(
        kernel,
        out_shape=jax.ShapeDtypeStruct((B, C, T_out), x.dtype),
        grid=(num_c_blocks, B),
        in_specs=in_specs,
        out_specs=pl.BlockSpec((None, Ct, T_out), lambda c, b: (b, c, 0)),
        scratch_shapes=scratch_shapes,
        compiler_params=pltpu.CompilerParams(
            dimension_semantics=("parallel", "parallel"),
            vmem_limit_bytes=vmem_limit),
        cost_estimate=cost,
    )(*inputs)


def _reference(x, weight, bias, padding, weight_softmax):
    """Independent reference using lax grouped conv (mirrors torch conv1d)."""
    B, C, T = x.shape
    H, _, K = weight.shape
    w = jax.nn.softmax(weight, axis=-1) if weight_softmax else weight
    xr = x.reshape(B * C // H, H, T)
    out = jax.lax.conv_general_dilated(
        xr, w, window_strides=(1,), padding=[(padding, padding)],
        dimension_numbers=("NCH", "OIH", "NCH"), feature_group_count=H)
    out = out.reshape(B, C, out.shape[-1])
    if bias is not None:
        out = out + bias[None, :, None]
    return out


if __name__ == "__main__":
    key = jax.random.PRNGKey(0)
    k1, k2, k3, k4, k5 = jax.random.split(key, 5)

    # Test 1: the common fairseq config — softmax weights, bias,
    # padding = (K-1)//2 so T_out == T (as the module's final view requires).
    B, C, T = 2, 8, 16
    H, K, P = 4, 3, 1
    x = jax.random.normal(k1, (B, C, T), dtype=jnp.float32)
    weight = jax.random.normal(k2, (H, 1, K), dtype=jnp.float32)
    bias = jax.random.normal(k3, (C,), dtype=jnp.float32)

    out = lightweight_conv1d(x, weight, bias, padding=P, weight_softmax=True)
    jax.block_until_ready(out)
    ref = _reference(x, weight, bias, P, True)
    assert out.shape == (B, C, T) and out.dtype == x.dtype
    assert jnp.allclose(out, ref, atol=1e-5, rtol=1e-5), \
        float(jnp.max(jnp.abs(out - ref)))

    # Test 2: no padding, no bias, K=1 (exercises the pad-free / bias-free path).
    K2 = 1
    x2 = jax.random.normal(k4, (B, C, T), dtype=jnp.float32)
    w2 = jax.random.normal(k5, (H, 1, K2), dtype=jnp.float32)
    out2 = lightweight_conv1d(x2, w2, None, padding=0, weight_softmax=False)
    jax.block_until_ready(out2)
    ref2 = _reference(x2, w2, None, 0, False)
    assert out2.shape == ref2.shape
    assert jnp.allclose(out2, ref2, atol=1e-5, rtol=1e-5), \
        float(jnp.max(jnp.abs(out2 - ref2)))

    print("KERNEL_OK")
</pallas_src>

<mosaic_0001>
module attributes {stable_mosaic.version = 11 : i64} {
  func.func @_lwconv_kernel(%arg0: i32, %arg1: i32, %arg2: memref<1x8x16xf32, #tpu.memory_space<vmem>>, %arg3: memref<8x3xf32, #tpu.memory_space<vmem>>, %arg4: memref<8x1xf32, #tpu.memory_space<vmem>>, %arg5: memref<1x8x16xf32, #tpu.memory_space<vmem>>, %arg6: memref<8x18xf32, #tpu.memory_space<vmem>>) attributes {dimension_semantics = [#tpu.dimension_semantics<parallel>, #tpu.dimension_semantics<parallel>], iteration_bounds = array<i64: 1, 2>, scalar_prefetch = 0 : i64, scratch_operands = 1 : i64, tpu.core_type = #tpu.core_type<tc>, window_params = [{transform_indices = @transform_0, window_bounds = array<i64: 1, 8, 16>}, {transform_indices = @transform_1, window_bounds = array<i64: 8, 3>}, {transform_indices = @transform_2, window_bounds = array<i64: 8, 1>}, {transform_indices = @transform_3, window_bounds = array<i64: 1, 8, 16>}]} {
    %cst = arith.constant 0.000000e+00 : f32
    %0 = vector.broadcast %cst : f32 to vector<8x1xf32>
    %c0 = arith.constant 0 : index
    %c0_0 = arith.constant 0 : index
    %1 = vector.load %arg6[%c0, %c0_0] : memref<8x18xf32, #tpu.memory_space<vmem>>, vector<8x1xf32>
    tpu.vector_store %arg6[%c0, %c0_0], %0 {strides = array<i32>} : memref<8x18xf32, #tpu.memory_space<vmem>>, vector<8x1xf32>,
    %c0_1 = arith.constant 0 : index
    %c17 = arith.constant 17 : index
    %2 = vector.load %arg6[%c0_1, %c17] : memref<8x18xf32, #tpu.memory_space<vmem>>, vector<8x1xf32>
    tpu.vector_store %arg6[%c0_1, %c17], %0 {strides = array<i32>} : memref<8x18xf32, #tpu.memory_space<vmem>>, vector<8x1xf32>,
    %c0_2 = arith.constant 0 : index
    %c0_3 = arith.constant 0 : index
    %c0_4 = arith.constant 0 : index
    %3 = vector.load %arg2[%c0_2, %c0_3, %c0_4] : memref<1x8x16xf32, #tpu.memory_space<vmem>>, vector<1x8x16xf32>
    %4 = vector.shape_cast %3 : vector<1x8x16xf32> to vector<8x16xf32>
    %c0_5 = arith.constant 0 : index
    %c1 = arith.constant 1 : index
    %5 = vector.load %arg6[%c0_5, %c1] : memref<8x18xf32, #tpu.memory_space<vmem>>, vector<8x16xf32>
    tpu.vector_store %arg6[%c0_5, %c1], %4 {strides = array<i32>} : memref<8x18xf32, #tpu.memory_space<vmem>>, vector<8x16xf32>,
    %c0_6 = arith.constant 0 : index
    %c0_7 = arith.constant 0 : index
    %6 = vector.load %arg3[%c0_6, %c0_7] : memref<8x3xf32, #tpu.memory_space<vmem>>, vector<8x1xf32>
    %c0_8 = arith.constant 0 : index
    %c0_9 = arith.constant 0 : index
    %7 = vector.load %arg6[%c0_8, %c0_9] : memref<8x18xf32, #tpu.memory_space<vmem>>, vector<8x16xf32>
    %8 = vector.broadcast %6 : vector<8x1xf32> to vector<8x16xf32>
    %9 = arith.mulf %8, %7 : vector<8x16xf32>
    %c0_10 = arith.constant 0 : index
    %c1_11 = arith.constant 1 : index
    %10 = vector.load %arg3[%c0_10, %c1_11] : memref<8x3xf32, #tpu.memory_space<vmem>>, vector<8x1xf32>
    %c0_12 = arith.constant 0 : index
    %c1_13 = arith.constant 1 : index
    %11 = vector.load %arg6[%c0_12, %c1_13] : memref<8x18xf32, #tpu.memory_space<vmem>>, vector<8x16xf32>
    %12 = vector.broadcast %10 : vector<8x1xf32> to vector<8x16xf32>
    %13 = arith.mulf %12, %11 : vector<8x16xf32>
    %14 = arith.addf %9, %13 : vector<8x16xf32>
    %c0_14 = arith.constant 0 : index
    %c2 = arith.constant 2 : index
    %15 = vector.load %arg3[%c0_14, %c2] : memref<8x3xf32, #tpu.memory_space<vmem>>, vector<8x1xf32>
    %c0_15 = arith.constant 0 : index
    %c2_16 = arith.constant 2 : index
    %16 = vector.load %arg6[%c0_15, %c2_16] : memref<8x18xf32, #tpu.memory_space<vmem>>, vector<8x16xf32>
    %17 = vector.broadcast %15 : vector<8x1xf32> to vector<8x16xf32>
    %18 = arith.mulf %17, %16 : vector<8x16xf32>
    %19 = arith.addf %14, %18 : vector<8x16xf32>
    %c0_17 = arith.constant 0 : index
    %c0_18 = arith.constant 0 : index
    %20 = vector.load %arg4[%c0_17, %c0_18] : memref<8x1xf32, #tpu.memory_space<vmem>>, vector<8x1xf32>
    %21 = vector.broadcast %20 : vector<8x1xf32> to vector<8x16xf32>
    %22 = arith.addf %19, %21 : vector<8x16xf32>
    %c0_19 = arith.constant 0 : index
    %c0_20 = arith.constant 0 : index
    %c0_21 = arith.constant 0 : index
    %23 = vector.load %arg5[%c0_19, %c0_20, %c0_21] : memref<1x8x16xf32, #tpu.memory_space<vmem>>, vector<1x8x16xf32>
    %24 = vector.shape_cast %23 : vector<1x8x16xf32> to vector<8x16xf32>
    %25 = vector.shape_cast %22 : vector<8x16xf32> to vector<1x8x16xf32>
    tpu.vector_store %arg5[%c0_19, %c0_20, %c0_21], %25 {strides = array<i32>} : memref<1x8x16xf32, #tpu.memory_space<vmem>>, vector<1x8x16xf32>,
    return
  }
  func.func @transform_0(%arg0: i32, %arg1: i32) -> (i32, i32, i32) {
    %c0_i32 = arith.constant 0 : i32
    %c0_i32_0 = arith.constant 0 : i32
    return %arg1, %arg0, %c0_i32 : i32, i32, i32
  }
  func.func @transform_1(%arg0: i32, %arg1: i32) -> (i32, i32) {
    %c0_i32 = arith.constant 0 : i32
    %c0_i32_0 = arith.constant 0 : i32
    return %arg0, %c0_i32 : i32, i32
  }
  func.func @transform_2(%arg0: i32, %arg1: i32) -> (i32, i32) {
    %c0_i32 = arith.constant 0 : i32
    %c0_i32_0 = arith.constant 0 : i32
    return %arg0, %c0_i32 : i32, i32
  }
  func.func @transform_3(%arg0: i32, %arg1: i32) -> (i32, i32, i32) {
    %c0_i32 = arith.constant 0 : i32
    %c0_i32_0 = arith.constant 0 : i32
    return %arg1, %arg0, %c0_i32 : i32, i32, i32
  }
}

</mosaic_0001>

<bundles_post_ra>
// kernel: tpu_custom_call.1
= control target key start
LH: loop header
LB: loop body
LE: loop exit
PB: predicated region body
PF: predicated region fallthrough
CT: control target
= control target key end

     0   :  { %8 = vsyncpa [#allocation4], 0  ;;  %s694_s0 = inlined_call_operand.vmem [shape: f32[2,8,16], index: 0, kind: input, shape index: {}]   ;;  %s695_s1 = inlined_call_operand.vmem [shape: f32[8,3], index: 1, kind: input, shape index: {}]   ;;  %s696_s2 = inlined_call_operand.vmem [shape: f32[8,1], index: 2, kind: input, shape index: {}]   ;;  %s697_s3 = inlined_call_operand.hbm [shape: f32[2,8,16], index: 3, kind: output, shape index: {}]  }
   0x1   :  { %10 = vsyncpa [#allocation4 + $0x1], 0  ;;  %s576_s12 = smov 0   ;;  %s578_s13 = smov 0  }
   0x2   :  { %s580_s14 = smov 0   ;;  %s582_s15 = smov 0  }
   0x3   :  { %s584_s16 = smov 0   ;;  %s586_s17 = smov 0  }
   0x4 LB: > { %s389_s18 = sadd.s32 4294967295, %s546_s17   ;;  %s390_s19 = sadd.s32 4294967294, %s546_s17   ;;  %s546_s17 = sphi %s586_s17, %s16_s17   ;;  %s542_s16 = sphi %s584_s16, %s704_s16   ;;  %s538_s15 = sphi %s582_s15, %s703_s15   ;;  %s534_s14 = sphi %s580_s14, %s702_s14   ;;  %s530_s13 = sphi %s578_s13, %s701_s13   ;;  %s526_s12 = sphi %s576_s12, %s700_s12  }
   0x5   : > { %s25_s20 = sadd.s32 1, %s542_s16  ;;  %s117_s21 = sadd.s32 1, %s534_s14 }
   0x6   : > { %p26_p0 = scmp.ge.s32.totalorder %s25_s20, 2  ;;  %p127_p1 = scmp.ne.s32.totalorder %s534_s14, %s530_s13 }
   0x7   : > { %p128_p2 = scmp.eq.s32.totalorder %s389_s18, 1  ;;  %p133_p3 = scmp.ne.s32.totalorder %s530_s13, %s526_s12 }
   0x8   : > { %s706_s20 = smov (%p26_p0, %s25_s20), 0  ;;  %p134_p5 = scmp.eq.s32.totalorder %s390_s19, 1 }
   0x9   : > { %p616_p4 = por %p128_p2, %p127_p1  ;;  %s112_s23 = ssub.s32 %s542_s16, %s706_s20 }
   0xa   : > { %p395_p6 = scmp.ge.s32.totalorder %s546_s17, 1  ;;  %p115_p7 = scmp.eq.s32.totalorder %s112_s23, 0 }
   0xb   : > { %p623_p8 = por %p134_p5, %p133_p3  ;;  %p176_p9 = scmp.lt.s32.totalorder %s546_s17, 3 }
   0xc   : > { %s629_s25 = scalar_select %p115_p7, %s534_s14, %s117_s21  }
   0xd   : > { %p177_p10 = pnand %p395_p6, %p176_p9 }
   0xe   : > { %v236_v0 = vld [vmem:[%s695_s1] sm:$0xff] (!%p177_p10)  ;;  %p210_p11 = scmp.lt.s32.totalorder (!%p177_p10), %s538_s15, 1  ;;  %v548_v1 = vmov (!%p177_p10), 2   ;;  %v549_v2 = vmov (!%p177_p10), 1   ;;  %vm225_vm0 = vcmask (!%p177_p10), 7168   ;;  %vm227_vm1 = vcmask (!%p177_p10), 146568  }
   0xf   : > { %180 = sbr.rel (%p177_p10) target bundleno = 296 (0x128), region = 32  ;;  %465 = vset.pattern.permute.xlu1 (!%p177_p10), %v548_v1  ;;  %464 = vset.pattern.permute.xlu0 (!%p177_p10), %v549_v2  ;;  %v550_v3 = vmov (!%p177_p10), 0.0   ;;  %v551_v4 = vmov (!%p177_p10), 0   ;;  %s552_s6 = smov (!%p177_p10), 1   ;;  %v264_v6 = vld [vmem:[%s696_s2] sm:$0xff] (!%p177_p10)  ;;  %vm234_vm2 = vcmask (!%p177_p10), 138248  }
  0x10   : > { %255 = vperm.xlu1 (!%p177_p10), %465, %v236_v0   ;;  %226 = vst.msk [vmem:[#allocation2] sm:$0xff] (!%p177_p10), %vm225_vm0, %v550_v3  ;;  %s553_s9 = smov (!%p177_p10), 126   ;;  %s554_s10 = smov (!%p177_p10), 127   ;;  %vm271_vm3 = vcmask (!%p177_p10), 130048  }
  0x11   : > { %228 = vst.msk [vmem:[#allocation2] sm:$0xff] (!%p177_p10), %vm227_vm1, %v550_v3  ;;  %s207_s11 = sand.u32 (!%p177_p10), 1, %s530_s13   ;;  %s399_s19 = sshll.u32 (!%p177_p10), %s538_s15, 7 }
  0x12   : > { %s396_s18 = sshll.u32 (!%p177_p10), %s207_s11, 3 }
  0x13   : > { %s209_s21 = scalar_lea.vmem (!%p177_p10), [#allocation3], %s396_s18 }
  0x14   : > { %466 = vset.pattern.permute.xlu1 (!%p177_p10), %v551_v4  ;;  %s288_s23 = sshll.u32 (!%p177_p10), %s209_s21, 4  ;;  %s649_s23 = int_to_ptr.vmem [resolvable:$true] %s288_s23 }
  0x15   : > { %240 = vperm.xlu1 (!%p177_p10), %466, %v236_v0   ;;  %s468_s30 = scalar_lea.vmem (!%p177_p10), %s649_s23, 128 }
  0x16   : > { %s211_s28 = scalar_select %p210_p11, %s538_s15, 1 }
  0x17   : > { %p469_p12 = scmp.ne.s32.totalorder %s649_s23, %s468_s30  ;;  %s555_s15 = smov [#allocation3]  }
  0x18   : > { %s397_s29 = sshll.u32 %s211_s28, 3  ;;  %s647_s28 = scalar_lea.hbm %s697_s3, %s399_s19 }
  0x19   : > { %s216_s5 = scalar_lea.vmem %s694_s0, %s397_s29  ;;  %267 = vperm.xlu1 %466, %v264_v6   ;;  %s274_s29 = scalar_lea.sflag [#allocation4], %s207_s11 }
  0x1a   : > { %v229_v5 = vld [vmem:[%s216_s5] sm:$0xff]  ;;  %p470_p13 = pnand %p469_p12, %p616_p4  ;;  %s472_s4 = sshll.u32 %s555_s15, 4  ;;  %s473_s4 = int_to_ptr.vmem [resolvable:$false] %s472_s4 }
  0x1b   : > { %231 = vrot.lane.b32.xlu0 %v229_v5, %s552_s6  ;;  %s474_s5 = scalar_lea.vmem %s473_s4, 256  ;;  %p475_p1 = scmp.lt.s32.totalorder %s649_s23, %s473_s4 }
  0x1c   : > { %p471_p0 = pneg %p470_p13  ;;  %p476_p2 = scmp.lt.s32.totalorder %s474_s5, %s468_s30 }
  0x1e   : > { %p477_p3 = por %p476_p2, %p475_p1 }
  0x1f   : > { %245 = vperm.xlu0 %464, %v236_v0  }
  0x20   : > { %p478_p5 = pnand %p477_p3, %p471_p0 }
  0x23   : > { %467 = vset.pattern.permute.xlu0 %v551_v4 }
  0x8d   : > { %v232_v7 = vpop.permute.xlu0 %231 }
  0x8e   : > { %235 = vst.msk [vmem:[#allocation2] sm:$0xff] %vm234_vm2, %v232_v7 }
  0x8f   : > { %v256_v8 = vpop.permute.xlu1 %255 }
  0x94   : > { %v241_v13 = vpop.permute.xlu1 %240 }
  0x95   : > { %v237_v9 = vld [vmem:[#allocation2] sm:$0xff] }
  0x96   : > { %v258_v10 = vmul.f32 %v256_v8, %v237_v9  ;;  %v243_v15 = vmul.f32 %v241_v13, %v237_v9 }
  0x98   : > { %260 = vrot.lane.b32.xlu1 %v258_v10, %s553_s9  ;;  %v268_v14 = vpop.permute.xlu1 %267 }
  0x9e   : > { %v246_v11 = vpop.permute.xlu0 %245 }
  0x9f   : > { %v248_v12 = vmul.f32 %v246_v11, %v237_v9 }
  0xa1   : > { %250 = vrot.lane.b32.xlu0 %v248_v12, %s554_s10 }
 0x10a   : > { %v261_v18 = vpop.permute.xlu1 %260 }
 0x113   : > { %v251_v16 = vpop.permute.xlu0 %250 }
 0x114   : > { %v253_v17 = vadd.f32 %v251_v16, %v243_v15 }
 0x116   : > { %v263_v19 = vadd.f32 %v261_v18, %v253_v17 }
 0x118   : > { %v270_v20 = vadd.f32 %v268_v14, %v263_v19 }
 0x11a   : > { %272 = vst.msk [vmem:[%s209_s21] sm:$0xff] %vm271_vm3, %v270_v20 }
 0x11b   : > { %481 = shalt.err (!%p478_p5)
}
 0x11c   : > { %s482_s6 = scalar_lea.hbm %s647_s28, 128  ;;  %s486_s9 = scalar_lea.hbm %s697_s3, 256 }
 0x11d   : > { %p483_p6 = scmp.ne.s32.totalorder %s647_s28, %s482_s6  ;;  %p487_p10 = scmp.lt.u32.totalorder %s647_s28, %s697_s3 }
 0x11e   : > { %p488_p11 = scmp.lt.u32.totalorder %s486_s9, %s482_s6  ;;  %p490_p13 = scmp.lt.u32.totalorder %s482_s6, %s647_s28 }
 0x11f   : > { %p484_p7 = pnand %p483_p6, %p616_p4 }
 0x120   : > { %p489_p12 = por %p488_p11, %p487_p10 }
 0x121   : > { %p485_p9 = pneg %p484_p7 }
 0x122   : > { %p491_p0 = por %p490_p13, %p489_p12 }
 0x124   : > { %p492_p1 = pnand %p491_p0, %p485_p9 }
 0x126   : > { %495 = shalt.err (!%p492_p1)
}
 0x127   : > { %402 = dma.vmem_to_hbm [thread:$0]  (%p616_p4), %s649_s23, 128, %s647_s28, %s274_s29  }
 0x128 PF: > { %p408_p2 = scmp.ge.s32.totalorder %s546_s17, 2  ;;  %s300_s18 = sand.u32 1, %s526_s12  }
 0x129   : > { %s301_s19 = scalar_lea.sflag [#allocation4], %s300_s18 }
 0x12a   : > { %p405_p3 = pnand %p408_p2, %p623_p8 }
 0x12c   : > { %521 = dma.done.wait (!%p405_p3), %s301_s19, 128  }
 0x12d   : > { %523 = vsyncadd (!%p405_p3), %s301_s19, 4294967168  ;;  %s16_s17 = sadd.s32 1, %s546_s17   ;;  %s700_s12 = smov %s530_s13 }
 0x12e   : > { %p13_p5 = scmp.ge.s32.totalorder %s16_s17, 4   ;;  %s701_s13 = smov %s534_s14 }
 0x12f   : > { %s702_s14 = smov %s629_s25  ;;  %s703_s15 = smov %s542_s16 }
 0x130   : > { %s704_s16 = smov %s706_s20  ;;  %15 = sbr.rel (!%p13_p5) target bundleno = 4 (0x4), region = 73 }
 0x137   :  { %306 = vsyncpa [#allocation4], 1 }
 0x138   :  { %308 = vsyncpa [#allocation4 + $0x1], 1 }

</bundles_post_ra>
